<compile_context>
chip_gen: v6e
topology: v6e:2x2x1
jax: 0.10.0
libtpu: 0.0.40
codegen_flags: <defaults>
</compile_context>

<pallas_src>
import jax
import jax.numpy as jnp
from jax.experimental import pallas as pl
from jax.experimental.pallas import tpu as pltpu

_MIB = 1024 * 1024


def _relu_kernel(x_ref, o_ref):
    # Elementwise max(x, 0) on the whole VMEM tile (single VPU op).
    o_ref[...] = jnp.maximum(x_ref[...], jnp.zeros((), dtype=x_ref.dtype))


def _vmem_capacity_bytes():
    try:
        return int(pltpu.get_tpu_info().vmem_capacity_bytes)
    except Exception:
        return 64 * _MIB  # conservative fallback (v7x per-TensorCore)


def _block_budget():
    """Per-generation (block_bytes, vmem_limit_bytes)."""
    vmem = _vmem_capacity_bytes()
    # ~VMEM/8 per block so 2-in + 2-out double buffers (4x block) plus
    # internal scratch fit comfortably under the raised limit.
    #   v7x  (64 MiB)  ->  8 MiB blocks, 48 MiB limit
    #   v5e/v6e (128)  -> 12 MiB blocks, 64 MiB limit
    target_block = min(12 * _MIB, max(4 * _MIB, vmem // 8))
    vmem_limit = min(vmem * 3 // 4, 4 * target_block + 16 * _MIB)
    vmem_limit = max(int(vmem_limit), 32 * _MIB)
    return int(target_block), vmem_limit


def _sublane_for(dtype):
    # Native sublane tile per dtype packing (f32: 8, bf16: 16, int8/fp8: 32).
    # Unexpected / sub-byte itemsizes fall back to 8 (still correct: full-dim
    # block or masked partial block handles it).
    return {4: 8, 2: 16, 1: 32}.get(jnp.dtype(dtype).itemsize, 8)


def _relu_2d(x2d, *, donate_input=False):
    rows, width = x2d.shape
    itemsize = jnp.dtype(x2d.dtype).itemsize
    sublane = _sublane_for(x2d.dtype)

    target_block_bytes, vmem_limit_bytes = _block_budget()

    # Rows per block targeting the per-generation block budget, aligned to
    # the native sublane tile.
    tr = max(sublane, target_block_bytes // (width * itemsize))
    tr = max(sublane, (tr // sublane) * sublane)

    # Guarantee >=2 (prefer >=4) grid steps on tensors above ~1 MiB so
    # dimension_semantics=("parallel",) can shard work across v7x's two
    # TensorCores.  No measurable cost on single-TC v5e/v6e.
    total_bytes = rows * width * itemsize
    if total_bytes > _MIB:
        min_steps = 4 if rows >= 4 * sublane else 2
        if rows >= min_steps * sublane:
            max_tr = max(sublane, (rows // min_steps // sublane) * sublane)
            tr = min(tr, max_tr)

    if tr >= rows:
        tr = rows  # single block; block shape equals full array dims

    grid = (pl.cdiv(rows, tr),)  # partial last block -> masked writes (exact)

    kwargs = {}
    if donate_input:
        # Halves HBM footprint for big activations; only takes effect if the
        # caller also donates x at the jit boundary (donate_argnums).
        kwargs["input_output_aliases"] = {0: 0}

    return pl.pallas_call(
        _relu_kernel,
        out_shape=jax.ShapeDtypeStruct((rows, width), x2d.dtype),
        grid_spec=pltpu.PrefetchScalarGridSpec(
            num_scalar_prefetch=0,
            grid=grid,
            # Default double-buffering; deeper pipelining would only steal
            # VMEM from block size on this DMA-bound kernel.
            in_specs=[pl.BlockSpec((tr, width), lambda i: (i, 0))],
            out_specs=pl.BlockSpec((tr, width), lambda i: (i, 0)),
        ),
        compiler_params=pltpu.CompilerParams(
            dimension_semantics=("parallel",),
            vmem_limit_bytes=vmem_limit_bytes,
        ),
        cost_estimate=pl.CostEstimate(
            flops=rows * width,
            transcendentals=0,
            bytes_accessed=2 * rows * width * itemsize,
        ),
        **kwargs,
    )(x2d)


def relu_pallas(x: jax.Array, donate_input: bool = False) -> jax.Array:
    """torch.relu(x) equivalent for arbitrary shapes/dtypes."""
    orig_shape = x.shape
    n = x.size
    if n == 0:
        return x

    itemsize = jnp.dtype(x.dtype).itemsize
    sublane = _sublane_for(x.dtype)
    total_bytes = n * itemsize
    # Need enough rows to split into >=4 sublane-aligned blocks when the
    # tensor is big enough to be worth sharding across two TensorCores.
    min_rows = 4 * sublane if total_bytes > _MIB else 1

    # Fast path: widest lane-dense slab width that divides n exactly
    # (zero-copy reshape, no pad, no tail slice).  Wider rows -> full
    # unmasked vst's and fewer grid steps per byte.
    widths = (32768, 16384, 8192, 4096, 2048, 1024, 512, 256, 128)
    width = None
    for w in widths:
        if n % w == 0 and n // w >= min_rows:
            width = w
            break
    if width is None:
        for w in widths:
            if n % w == 0:
                width = w
                break

    if width is not None:
        out2d = _relu_2d(x.reshape(n // width, width), donate_input=donate_input)
        return out2d.reshape(orig_shape)

    # Ragged case (n not a multiple of 128): a fused jnp.maximum is one HBM
    # read + one write; the old pad->kernel->slice path moved ~3x the bytes.
    return jnp.maximum(x, jnp.zeros((), dtype=x.dtype))


if __name__ == "__main__":
    key = jax.random.PRNGKey(0)

    # Small NCHW input consistent with typical conv activations.
    x = jax.random.normal(key, (2, 4, 16, 16), dtype=jnp.float32)
    y = relu_pallas(x)
    jax.block_until_ready(y)
    assert y.shape == x.shape and y.dtype == x.dtype
    assert jnp.array_equal(y, jnp.maximum(x, 0.0)), "Pallas ReLU mismatch"

    # Mid-size (>1 MiB) input to exercise the multi-step grid (two-TC split).
    x_big = jax.random.normal(jax.random.PRNGKey(2), (8, 64, 32, 32),
                              dtype=jnp.float32)
    y_big = relu_pallas(x_big)
    jax.block_until_ready(y_big)
    assert jnp.array_equal(y_big, jnp.maximum(x_big, 0.0)), "Mid-size mismatch"

    # Ragged size (not a multiple of 128) takes the fused jnp fallback.
    x2 = jax.random.normal(jax.random.PRNGKey(1), (3, 5, 7), dtype=jnp.float32)
    y2 = relu_pallas(x2)
    jax.block_until_ready(y2)
    assert jnp.array_equal(y2, jnp.maximum(x2, 0.0)), "Ragged-path mismatch"

    print("KERNEL_OK")
</pallas_src>

<mosaic_0001>
module attributes {stable_mosaic.version = 11 : i64} {
  func.func @_relu_kernel(%arg0: i32, %arg1: memref<1x2048xf32, #tpu.memory_space<vmem>>, %arg2: memref<1x2048xf32, #tpu.memory_space<vmem>>) attributes {dimension_semantics = [#tpu.dimension_semantics<parallel>], iteration_bounds = array<i64: 1>, scalar_prefetch = 0 : i64, scratch_operands = 0 : i64, tpu.core_type = #tpu.core_type<tc>, window_params = [{transform_indices = @transform_0, window_bounds = array<i64: 1, 2048>}, {transform_indices = @transform_1, window_bounds = array<i64: 1, 2048>}]} {
    %c0 = arith.constant 0 : index
    %c0_0 = arith.constant 0 : index
    %0 = vector.load %arg1[%c0, %c0_0] : memref<1x2048xf32, #tpu.memory_space<vmem>>, vector<1x2048xf32>
    %cst = arith.constant 0.000000e+00 : f32
    %1 = vector.broadcast %cst : f32 to vector<1x2048xf32>
    %2 = arith.maximumf %0, %1 : vector<1x2048xf32>
    %c0_1 = arith.constant 0 : index
    %c0_2 = arith.constant 0 : index
    %3 = vector.load %arg2[%c0_1, %c0_2] : memref<1x2048xf32, #tpu.memory_space<vmem>>, vector<1x2048xf32>
    tpu.vector_store %arg2[%c0_1, %c0_2], %2 {strides = array<i32>} : memref<1x2048xf32, #tpu.memory_space<vmem>>, vector<1x2048xf32>,
    return
  }
  func.func @transform_0(%arg0: i32) -> (i32, i32) {
    %c0_i32 = arith.constant 0 : i32
    %c0_i32_0 = arith.constant 0 : i32
    return %arg0, %c0_i32 : i32, i32
  }
  func.func @transform_1(%arg0: i32) -> (i32, i32) {
    %c0_i32 = arith.constant 0 : i32
    %c0_i32_0 = arith.constant 0 : i32
    return %arg0, %c0_i32 : i32, i32
  }
}

</mosaic_0001>

<bundles_post_ra>
// kernel: tpu_custom_call.1
= control target key start
LH: loop header
LB: loop body
LE: loop exit
PB: predicated region body
PF: predicated region fallthrough
CT: control target
= control target key end

     0   :  { %6 = vsyncpa [#allocation3], 0  ;;  %s106_s0 = inlined_call_operand.hbm [shape: f32[1,2048], index: 0, kind: input, shape index: {}]   ;;  %s107_s1 = inlined_call_operand.hbm [shape: f32[1,2048], index: 1, kind: output, shape index: {}]  }
   0x1   :  { %7 = vsyncpa [#allocation4], 0  ;;  %s88_s6 = smov [#allocation2]  }
   0x2   :  { %s14_s7 = sshll.u32 %s88_s6, 4  ;;  %s15_s7 = int_to_ptr.vmem [resolvable:$true] %s14_s7 }
   0x3   :  { %s52_s8 = scalar_lea.vmem %s15_s7, 256  ;;  %p57_p1 = scmp.lt.s32.totalorder %s15_s7, %s15_s7 }
   0x4   :  { %p53_p0 = scmp.ne.s32.totalorder %s15_s7, %s52_s8  ;;  %p58_p2 = scmp.lt.s32.totalorder %s52_s8, %s52_s8 }
   0x6   :  { %p59_p3 = por %p58_p2, %p57_p1 }
   0x8   :  { %p60_p4 = pnand %p59_p3, %p53_p0 }
   0xa   :  { %63 = shalt.err (!%p60_p4)
}
   0xb   :  { %17 = dma.hbm_to_vmem [thread:$0]  %s106_s0, 256, %s15_s7, [#allocation3]  }
   0xc   :  { %84 = dma.done.wait [#allocation3], 256  }
   0xd   :  { %85 = vsyncadd [#allocation3], 4294967040  ;;  %s89_s11 = smov [#allocation5]   ;;  %v21_v0 = vld [vmem:[#allocation2] sm:$0xff]  ;;  %v22_v1 = vld [vmem:[#allocation2 + $0x8] sm:$0xff] }
   0xe   :  { %s33_s12 = sshll.u32 %s89_s11, 4  ;;  %v23_v2 = vmax.f32 %v21_v0, 0.0  ;;  %v24_v3 = vmax.f32 %v22_v1, 0.0  ;;  %s34_s12 = int_to_ptr.vmem [resolvable:$true] %s33_s12 }
   0xf   :  { %s64_s13 = scalar_lea.vmem %s34_s12, 256  ;;  %p69_p6 = scmp.lt.s32.totalorder %s34_s12, %s34_s12 }
  0x10   :  { %25 = vst [vmem:[#allocation5] sm:$0xff] %v23_v2  ;;  %26 = vst [vmem:[#allocation5 + $0x8] sm:$0xff] %v24_v3  ;;  %p65_p5 = scmp.ne.s32.totalorder %s34_s12, %s64_s13  ;;  %p70_p7 = scmp.lt.s32.totalorder %s64_s13, %s64_s13 }
  0x12   :  { %p71_p8 = por %p70_p7, %p69_p6 }
  0x14   :  { %p72_p9 = pnand %p71_p8, %p65_p5 }
  0x16   :  { %75 = shalt.err (!%p72_p9)
}
  0x17   :  { %36 = dma.vmem_to_hbm [thread:$0]  %s34_s12, 256, %s107_s1, [#allocation4]  }
  0x18   :  { %86 = dma.done.wait [#allocation4], 256  }
  0x19   :  { %87 = vsyncadd [#allocation4], 4294967040 }
  0x1a   :  { %40 = vsyncpa [#allocation3], 1 }
  0x1b   :  { %41 = vsyncpa [#allocation4], 1 }

</bundles_post_ra>
